<compile_context>
chip_gen: v5e
topology: v5e:2x2
jax: 0.10.0
libtpu: 0.0.40
codegen_flags: <defaults>
</compile_context>

<pallas_src>
import jax
import jax.numpy as jnp
from jax.experimental import pallas as pl
from jax.experimental.pallas import tpu as pltpu


def _round_up(x: int, m: int) -> int:
    return ((x + m - 1) // m) * m


def _vmem_capacity_bytes() -> int:
    """Physical VMEM per TensorCore; conservative (v7x, 64 MiB) if unknown."""
    try:
        cap = getattr(pltpu.get_tpu_info(), "vmem_capacity_bytes", None)
        if cap:
            return int(cap)
    except Exception:
        pass
    return 64 << 20


def _vmem_limit_bytes() -> int:
    # ~85% of physical, capped: ~54 MiB on v7x (64 MiB physical),
    # ~109 MiB on v5e/v6e (128 MiB physical; v5e's scoped default is only
    # 16 MiB, so the explicit limit must stay).
    return min(int(_vmem_capacity_bytes() * 0.85), 112 << 20)


def _pick_tm(B: int, Dp: int, vmem_limit: int) -> int:
    """Largest batch tile such that single-buffered weights/biases +
    double-buffered x/out tiles + in-kernel temporaries fit the VMEM limit."""
    # Single-buffered residents: bf16 W1+W2, f32 b1+b2.
    resident = 2 * Dp * Dp * 2 + 2 * Dp * 4
    avail = max(vmem_limit - resident - (2 << 20), 1 << 20)
    # Per batch row: 2 bufs * f32 x tile + 2 bufs * f32 out tile
    # + ~12 B/elem kernel temporaries (h f32, y f32, bf16 casts).
    per_row = Dp * (2 * 4 + 2 * 4 + 12)
    tm = int(avail // per_row)
    tm = min(tm, 1024)
    if B > 8:
        # Keep >= 2 grid steps so the "parallel" axis can split over v7x's 2 TCs.
        tm = min(tm, _round_up(pl.cdiv(B, 2), 8))
    if tm >= 512:
        tm = (tm // 256) * 256          # clean 256-wide MXU passes (v6e/v7x)
    tm = max(8, (tm // 8) * 8)
    tm = min(tm, _round_up(B, 8))       # never exceed the (8-rounded) batch
    return int(tm)


def residual_block_kernel(x_ref, w1_ref, b1_ref, w2_ref, b2_ref, o_ref):
    # x tile [TM, Dp] f32; W1/W2 [Dp, Dp] bf16 (VMEM-resident, single-buffered);
    # b1/b2 [1, Dp] f32.  bf16 MXU inputs, f32 accumulate, f32 elementwise (VPU).
    h = jnp.dot(x_ref[...].astype(jnp.bfloat16), w1_ref[...],
                preferred_element_type=jnp.float32)
    h = jnp.maximum(h + b1_ref[...], 0.0)

    y = jnp.dot(h.astype(jnp.bfloat16), w2_ref[...],
                preferred_element_type=jnp.float32)
    y = jnp.maximum(y + b2_ref[...], 0.0)

    # Residual + final ReLU: re-read x from the already-resident VMEM tile
    # instead of keeping the f32 x live across both matmuls.
    o_ref[...] = jnp.maximum(y + x_ref[...], 0.0).astype(o_ref.dtype)


def prepare_residual_block_params(w1, b1, w2, b2):
    """One-time parameter prep (hoisted out of the per-call path):
    transpose to (in, out) layout, zero-pad features to a multiple of 128,
    cast weights to bf16.  Zero padding keeps the math exact."""
    D = w1.shape[0]
    Dp = _round_up(D, 128)
    pad = Dp - D
    w1_t = jnp.pad(w1.T, ((0, pad), (0, pad))).astype(jnp.bfloat16)
    w2_t = jnp.pad(w2.T, ((0, pad), (0, pad))).astype(jnp.bfloat16)
    b1_2d = jnp.pad(b1, (0, pad)).reshape(1, Dp).astype(jnp.float32)
    b2_2d = jnp.pad(b2, (0, pad)).reshape(1, Dp).astype(jnp.float32)
    return (w1_t, b1_2d, w2_t, b2_2d, D, Dp)


def _resident_spec(shape):
    # Constant index_map + single buffer: operand stays VMEM-resident across
    # all grid steps without paying for a second pipeline buffer.
    return pl.BlockSpec(shape, lambda i: (0,) * len(shape),
                        pipeline_mode=pl.Buffered(1))


def residual_block(x, params):
    """x: [B, D] float32; params from prepare_residual_block_params."""
    w1_t, b1_2d, w2_t, b2_2d, D, Dp = params
    B = x.shape[0]
    assert x.shape[1] == D

    vmem_limit = _vmem_limit_bytes()
    tm = _pick_tm(B, Dp, vmem_limit)
    grid = (pl.cdiv(B, tm),)   # ragged last block: rows independent, OOB writes clipped

    if Dp == D:
        x_in = x               # lane-aligned: no pad, no slice, no extra HBM traffic
    else:
        # Feature pad only (never the batch dim); padded x lanes meet
        # zero-padded weight rows, so they contribute nothing to the matmuls.
        x_in = jnp.pad(x, ((0, 0), (0, Dp - D)))

    out_p = pl.pallas_call(
        residual_block_kernel,
        out_shape=jax.ShapeDtypeStruct((B, Dp), x.dtype),
        grid_spec=pltpu.PrefetchScalarGridSpec(
            num_scalar_prefetch=0,
            grid=grid,
            in_specs=[
                pl.BlockSpec((tm, Dp), lambda i: (i, 0)),  # x: batch-tiled, double-buffered
                _resident_spec((Dp, Dp)),                  # W1: VMEM-resident, 1 buffer
                _resident_spec((1, Dp)),                   # b1
                _resident_spec((Dp, Dp)),                  # W2
                _resident_spec((1, Dp)),                   # b2
            ],
            out_specs=pl.BlockSpec((tm, Dp), lambda i: (i, 0)),
        ),
        compiler_params=pltpu.CompilerParams(
            dimension_semantics=("parallel",),  # batch blocks split across v7x's 2 TCs
            vmem_limit_bytes=vmem_limit,
        ),
    )(x_in, w1_t, b1_2d, w2_t, b2_2d)

    return out_p if Dp == D else out_p[:, :D]


def _torch_linear_init(key, out_features, in_features):
    # Deterministic stand-in for torch.nn.Linear default init:
    # U(-1/sqrt(in), 1/sqrt(in)) for both weight and bias.
    kw, kb = jax.random.split(key)
    bound = 1.0 / (in_features ** 0.5)
    w = jax.random.uniform(kw, (out_features, in_features), jnp.float32,
                           minval=-bound, maxval=bound)
    b = jax.random.uniform(kb, (out_features,), jnp.float32,
                           minval=-bound, maxval=bound)
    return w, b


if __name__ == "__main__":
    B, D = 8, 32  # batch, input_dim  (ResidualBlock(input_dim=32, bottleneck=None))

    key = jax.random.PRNGKey(0)
    kx, k1, k2 = jax.random.split(key, 3)

    x = jax.random.normal(kx, (B, D), jnp.float32)
    w1, b1 = _torch_linear_init(k1, D, D)
    w2, b2 = _torch_linear_init(k2, D, D)

    # One-time parameter prep (transpose / pad / bf16 cast) outside the call path.
    params = prepare_residual_block_params(w1, b1, w2, b2)

    out = jax.block_until_ready(residual_block(x, params))

    # Pure-JAX f32 reference of the same forward pass.  The kernel feeds the
    # MXU bf16 operands (f32 accumulate), so compare with a bf16-appropriate
    # tolerance.
    h_ref = jnp.maximum(x @ w1.T + b1, 0.0)
    y_ref = jnp.maximum(h_ref @ w2.T + b2, 0.0)
    ref = jnp.maximum(y_ref + x, 0.0)
    assert out.shape == ref.shape
    err = jnp.max(jnp.abs(out - ref))
    assert jnp.allclose(out, ref, atol=2e-2, rtol=2e-2), f"max abs err {err}"

    print("KERNEL_OK")
</pallas_src>

<mosaic_0001>
module attributes {stable_mosaic.version = 11 : i64} {
  func.func @residual_block_kernel(%arg0: i32, %arg1: memref<8x128xf32, #tpu.memory_space<vmem>>, %arg2: memref<128x128xbf16, #tpu.memory_space<vmem>>, %arg3: memref<1x128xf32, #tpu.memory_space<vmem>>, %arg4: memref<128x128xbf16, #tpu.memory_space<vmem>>, %arg5: memref<1x128xf32, #tpu.memory_space<vmem>>, %arg6: memref<8x128xf32, #tpu.memory_space<vmem>>) attributes {dimension_semantics = [#tpu.dimension_semantics<parallel>], iteration_bounds = array<i64: 1>, scalar_prefetch = 0 : i64, scratch_operands = 0 : i64, tpu.core_type = #tpu.core_type<tc>, window_params = [{transform_indices = @transform_0, window_bounds = array<i64: 8, 128>}, {pipeline_mode = #tpu.pipeline_mode<synchronous>, transform_indices = @transform_1, window_bounds = array<i64: 128, 128>}, {pipeline_mode = #tpu.pipeline_mode<synchronous>, transform_indices = @transform_2, window_bounds = array<i64: 1, 128>}, {pipeline_mode = #tpu.pipeline_mode<synchronous>, transform_indices = @transform_3, window_bounds = array<i64: 128, 128>}, {pipeline_mode = #tpu.pipeline_mode<synchronous>, transform_indices = @transform_4, window_bounds = array<i64: 1, 128>}, {transform_indices = @transform_5, window_bounds = array<i64: 8, 128>}]} {
    %c0 = arith.constant 0 : index
    %c0_0 = arith.constant 0 : index
    %0 = vector.load %arg1[%c0, %c0_0] : memref<8x128xf32, #tpu.memory_space<vmem>>, vector<8x128xf32>
    %1 = arith.truncf %0 : vector<8x128xf32> to vector<8x128xbf16>
    %c0_1 = arith.constant 0 : index
    %c0_2 = arith.constant 0 : index
    %2 = vector.load %arg2[%c0_1, %c0_2] : memref<128x128xbf16, #tpu.memory_space<vmem>>, vector<128x128xbf16>
    %cst = arith.constant dense<0.000000e+00> : vector<8x128xf32>
    %3 = tpu.matmul %1, %2, %cst {dimension_numbers = #tpu.dot_dimension_numbers<[1], [0], [0], [1], [0, 0, 1, 1], [], []>} : vector<8x128xbf16>, vector<128x128xbf16>, vector<8x128xf32> -> vector<8x128xf32>
    %c0_3 = arith.constant 0 : index
    %c0_4 = arith.constant 0 : index
    %4 = vector.load %arg3[%c0_3, %c0_4] : memref<1x128xf32, #tpu.memory_space<vmem>>, vector<1x128xf32>
    %5 = vector.broadcast %4 : vector<1x128xf32> to vector<8x128xf32>
    %6 = arith.addf %3, %5 : vector<8x128xf32>
    %cst_5 = arith.constant 0.000000e+00 : f32
    %7 = vector.broadcast %cst_5 : f32 to vector<8x128xf32>
    %8 = arith.maximumf %6, %7 : vector<8x128xf32>
    %9 = arith.truncf %8 : vector<8x128xf32> to vector<8x128xbf16>
    %c0_6 = arith.constant 0 : index
    %c0_7 = arith.constant 0 : index
    %10 = vector.load %arg4[%c0_6, %c0_7] : memref<128x128xbf16, #tpu.memory_space<vmem>>, vector<128x128xbf16>
    %cst_8 = arith.constant dense<0.000000e+00> : vector<8x128xf32>
    %11 = tpu.matmul %9, %10, %cst_8 {dimension_numbers = #tpu.dot_dimension_numbers<[1], [0], [0], [1], [0, 0, 1, 1], [], []>} : vector<8x128xbf16>, vector<128x128xbf16>, vector<8x128xf32> -> vector<8x128xf32>
    %c0_9 = arith.constant 0 : index
    %c0_10 = arith.constant 0 : index
    %12 = vector.load %arg5[%c0_9, %c0_10] : memref<1x128xf32, #tpu.memory_space<vmem>>, vector<1x128xf32>
    %13 = vector.broadcast %12 : vector<1x128xf32> to vector<8x128xf32>
    %14 = arith.addf %11, %13 : vector<8x128xf32>
    %cst_11 = arith.constant 0.000000e+00 : f32
    %15 = vector.broadcast %cst_11 : f32 to vector<8x128xf32>
    %16 = arith.maximumf %14, %15 : vector<8x128xf32>
    %c0_12 = arith.constant 0 : index
    %c0_13 = arith.constant 0 : index
    %17 = vector.load %arg1[%c0_12, %c0_13] : memref<8x128xf32, #tpu.memory_space<vmem>>, vector<8x128xf32>
    %18 = arith.addf %16, %17 : vector<8x128xf32>
    %cst_14 = arith.constant 0.000000e+00 : f32
    %19 = vector.broadcast %cst_14 : f32 to vector<8x128xf32>
    %20 = arith.maximumf %18, %19 : vector<8x128xf32>
    %c0_15 = arith.constant 0 : index
    %c0_16 = arith.constant 0 : index
    %21 = vector.load %arg6[%c0_15, %c0_16] : memref<8x128xf32, #tpu.memory_space<vmem>>, vector<8x128xf32>
    tpu.vector_store %arg6[%c0_15, %c0_16], %20 {strides = array<i32>} : memref<8x128xf32, #tpu.memory_space<vmem>>, vector<8x128xf32>,
    return
  }
  func.func @transform_0(%arg0: i32) -> (i32, i32) {
    %c0_i32 = arith.constant 0 : i32
    %c0_i32_0 = arith.constant 0 : i32
    return %arg0, %c0_i32 : i32, i32
  }
  func.func @transform_1(%arg0: i32) -> (i32, i32) {
    %c0_i32 = arith.constant 0 : i32
    %c0_i32_0 = arith.constant 0 : i32
    %c0_i32_1 = arith.constant 0 : i32
    return %c0_i32, %c0_i32_0 : i32, i32
  }
  func.func @transform_2(%arg0: i32) -> (i32, i32) {
    %c0_i32 = arith.constant 0 : i32
    %c0_i32_0 = arith.constant 0 : i32
    %c0_i32_1 = arith.constant 0 : i32
    return %c0_i32, %c0_i32_0 : i32, i32
  }
  func.func @transform_3(%arg0: i32) -> (i32, i32) {
    %c0_i32 = arith.constant 0 : i32
    %c0_i32_0 = arith.constant 0 : i32
    %c0_i32_1 = arith.constant 0 : i32
    return %c0_i32, %c0_i32_0 : i32, i32
  }
  func.func @transform_4(%arg0: i32) -> (i32, i32) {
    %c0_i32 = arith.constant 0 : i32
    %c0_i32_0 = arith.constant 0 : i32
    %c0_i32_1 = arith.constant 0 : i32
    return %c0_i32, %c0_i32_0 : i32, i32
  }
  func.func @transform_5(%arg0: i32) -> (i32, i32) {
    %c0_i32 = arith.constant 0 : i32
    %c0_i32_0 = arith.constant 0 : i32
    return %arg0, %c0_i32 : i32, i32
  }
}

</mosaic_0001>

<bundles_post_ra>
// kernel: tpu_custom_call.1
= control target key start
LH: loop header
LB: loop body
LE: loop exit
PB: predicated region body
PF: predicated region fallthrough
CT: control target
= control target key end

     0   :  { %10 = vsyncpa [#allocation3], 0  ;;  %s498_s0 = inlined_call_operand.hbm [shape: f32[8,128], index: 0, kind: input, shape index: {}]   ;;  %s499_s1 = inlined_call_operand.hbm [shape: bf16[128,128], index: 1, kind: input, shape index: {}]   ;;  %s500_s2 = inlined_call_operand.vmem [shape: f32[1,128], index: 2, kind: input, shape index: {}]   ;;  %s501_s3 = inlined_call_operand.hbm [shape: bf16[128,128], index: 3, kind: input, shape index: {}]   ;;  %s502_s4 = inlined_call_operand.vmem [shape: f32[1,128], index: 4, kind: input, shape index: {}]   ;;  %s503_s5 = inlined_call_operand.hbm [shape: f32[8,128], index: 5, kind: output, shape index: {}]  }
   0x1   :  { %11 = vsyncpa [#allocation6], 0  ;;  %s28_s20 = sshll.u32 %s499_s1, 4  ;;  %s29_s20 = int_to_ptr.hbm [resolvable:$true] %s28_s20 }
   0x2   :  { %12 = vsyncpa [#allocation4], 0  ;;  %s444_s21 = smov [#allocation5]   ;;  %s18_s25 = sshll.u32 %s498_s0, 4  ;;  %s19_s25 = int_to_ptr.hbm [resolvable:$true] %s18_s25 }
   0x3   :  { %s30_s22 = sshll.u32 %s444_s21, 4  ;;  %s445_s26 = smov 64   ;;  %s31_s22 = int_to_ptr.vmem [resolvable:$true] %s30_s22 }
   0x4   :  { %s446_s27 = smov 4   ;;  %s447_s28 = smov [#allocation2]  }
   0x5   :  { %36 = dma.hbm_to_vmem [thread:$0]  %s29_s20, 1024, %s31_s22, [#allocation6], %s445_s26, %s445_s26, %s446_s27  }
   0x6   :  { %s20_s29 = sshll.u32 %s447_s28, 4  ;;  %s43_s7 = sshll.u32 %s501_s3, 4  ;;  %s21_s29 = int_to_ptr.vmem [resolvable:$true] %s20_s29  ;;  %s44_s7 = int_to_ptr.hbm [resolvable:$true] %s43_s7 }
   0x7   :  { %23 = dma.hbm_to_vmem [thread:$0]  %s19_s25, 128, %s21_s29, [#allocation3]  }
   0x8   :  { %s448_s1 = smov [#allocation7]  }
   0x9   :  { %s45_s8 = sshll.u32 %s448_s1, 4  ;;  %s46_s8 = int_to_ptr.vmem [resolvable:$true] %s45_s8 }
   0xa   :  { %51 = dma.hbm_to_vmem [thread:$0]  %s44_s7, 1024, %s46_s8, [#allocation6], %s445_s26, %s445_s26, %s446_s27  }
   0xb   :  { %438 = dma.done.wait [#allocation3], 128  }
   0xc   :  { %439 = vsyncadd [#allocation3], 4294967168 }
   0xd   :  { %440 = dma.done.wait [#allocation6], 2048  }
   0xe   :  { %441 = vsyncadd [#allocation6], 4294965248  ;;  %v325_v0 = vld [vmem:[#allocation5 + $0x38] sm:$0xff]  ;;  %v324_v1 = vld [vmem:[#allocation5 + $0x30] sm:$0xff]  ;;  %s449_s11 = smov [#allocation8]   ;;  %s243_s15 = sshll.u32 %s503_s5, 4  ;;  %s244_s15 = int_to_ptr.hbm [resolvable:$true] %s243_s15 }
   0xf   :  { %136 = vmatpush.bf16.msra.mxu0 %v325_v0  ;;  %v333_v2 = vld [vmem:[#allocation7 + $0x38] sm:$0xff]  ;;  %v332_v3 = vld [vmem:[#allocation7 + $0x30] sm:$0xff]  ;;  %v323_v4 = vld [vmem:[#allocation5 + $0x28] sm:$0xff]  ;;  %s241_s12 = sshll.u32 %s449_s11, 4  ;;  %s242_s12 = int_to_ptr.vmem [resolvable:$true] %s241_s12 }
  0x10   :  { %219 = vmatpush.bf16.msra.mxu1 %v333_v2  ;;  %v331_v5 = vld [vmem:[#allocation7 + $0x28] sm:$0xff]  ;;  %v322_v6 = vld [vmem:[#allocation5 + $0x20] sm:$0xff]  ;;  %v321_v8 = vld [vmem:[#allocation5 + $0x18] sm:$0xff] }
  0x11   :  { %v330_v7 = vld [vmem:[#allocation7 + $0x20] sm:$0xff]  ;;  %v329_v9 = vld [vmem:[#allocation7 + $0x18] sm:$0xff]  ;;  %v320_v10 = vld [vmem:[#allocation5 + $0x10] sm:$0xff] }
  0x12   :  { %v328_v11 = vld [vmem:[#allocation7 + $0x10] sm:$0xff]  ;;  %v319_v12 = vld [vmem:[#allocation5 + $0x8] sm:$0xff]  ;;  %v318_v13 = vld [vmem:[#allocation5] sm:$0xff] }
  0x13   :  { %137 = vmatpush.bf16.msra.mxu0 %v324_v1  ;;  %v66_v14 = vld [vmem:[#allocation2] sm:$0xff]  ;;  %v327_v16 = vld [vmem:[#allocation7 + $0x8] sm:$0xff]  ;;  %v326_v17 = vld [vmem:[#allocation7] sm:$0xff] }
  0x14   :  { %220 = vmatpush.bf16.msra.mxu1 %v332_v3  ;;  %v67_v15 = vpack.c.bf16 %v66_v14, %v66_v14  ;;  %v340_v18 = vld [vmem:[%s500_s2] ss:$0 sm:$0xff] }
  0x15   :  { %v341_v24 = vld [vmem:[%s502_s4] ss:$0 sm:$0xff] }
  0x17   :  { %138 = vmatpush.bf16.msra.mxu0 %v323_v4 }
  0x18   :  { %221 = vmatpush.bf16.msra.mxu1 %v331_v5 }
  0x1b   :  { %139 = vmatpush.bf16.msra.mxu0 %v322_v6 }
  0x1c   :  { %222 = vmatpush.bf16.msra.mxu1 %v330_v7 }
  0x1f   :  { %140 = vmatpush.bf16.msra.mxu0 %v321_v8 }
  0x20   :  { %223 = vmatpush.bf16.msra.mxu1 %v329_v9 }
  0x23   :  { %141 = vmatpush.bf16.msra.mxu0 %v320_v10 }
  0x24   :  { %224 = vmatpush.bf16.msra.mxu1 %v328_v11 }
  0x27   :  { %142 = vmatpush.bf16.msra.mxu0 %v319_v12 }
  0x28   :  { %225 = vmatpush.bf16.msra.mxu1 %v327_v16 }
  0x2b   :  { %143 = vmatpush.bf16.msra.mxu0 %v318_v13 }
  0x2c   :  { %226 = vmatpush.bf16.msra.mxu1 %v326_v17 }
  0x2e   :  { %144 = vmatmul.bf16.vlgmr.msra.gmra.mxu0 %v67_v15 }
  0xab   :  { %v145_v19 = vpop.f32.mrf.mxu0 }
  0xac   :  { %v146_v20 = vadd.f32 %v340_v18, %v145_v19 }
  0xae   :  { %v149_v21 = vmax.f32 %v146_v20, 0.0 }
  0xb0   :  { %v150_v22 = vpack.c.bf16 %v149_v21, %v149_v21 }
  0xb2   :  { %227 = vmatmul.bf16.vlgmr.msra.gmra.mxu1 %v150_v22 }
  0xb3   :  { %v147_v23 = vpop.f32.mrf.mxu0 }
 0x12f   :  { %v228_v25 = vpop.f32.mrf.mxu1 }
 0x130   :  { %v229_v26 = vadd.f32 %v341_v24, %v228_v25 }
 0x132   :  { %v232_v27 = vmax.f32 %v229_v26, 0.0 }
 0x134   :  { %v233_v28 = vadd.f32 %v232_v27, %v66_v14 }
 0x136   :  { %v234_v29 = vmax.f32 %v233_v28, 0.0 }
 0x137   :  { %v230_v30 = vpop.f32.mrf.mxu1 }
 0x138   :  { %235 = vst [vmem:[#allocation8] sm:$0xff] %v234_v29 }
 0x139   :  { %246 = dma.vmem_to_hbm [thread:$0]  %s242_s12, 128, %s244_s15, [#allocation4]  }
 0x13a   :  { %442 = dma.done.wait [#allocation4], 128  }
 0x13b   :  { %443 = vsyncadd [#allocation4], 4294967168 }
 0x13c   :  { %251 = vsyncpa [#allocation3], 1 }
 0x13d   :  { %252 = vsyncpa [#allocation6], 1 }
 0x13e   :  { %253 = vsyncpa [#allocation4], 1 }

</bundles_post_ra>
